<compile_context>
chip_gen: v5e
topology: v5e:2x2
jax: 0.10.0
libtpu: 0.0.40
codegen_flags: <defaults>
</compile_context>

<pallas_src>
import functools

import jax
import jax.numpy as jnp
from jax import lax
from jax.experimental import pallas as pl
from jax.experimental.pallas import tpu as pltpu

_LANE = 128
_SUBLANE = 8


def _round_up(x, m):
    return ((x + m - 1) // m) * m


def _tpu_vmem_and_cores():
    """Physical VMEM bytes per TensorCore and whether the chip has 2 TensorCores."""
    vmem = None
    try:
        vmem = int(pltpu.get_tpu_info().vmem_capacity_bytes)
    except Exception:
        vmem = None
    kind = ""
    try:
        kind = jax.devices()[0].device_kind.lower()
    except Exception:
        kind = ""
    two_cores = "7" in kind  # v7x: 2 TensorCores / chip, 64 MiB VMEM / core
    if vmem is None:
        vmem = (64 << 20) if (two_cores or not kind) else (128 << 20)
    return vmem, two_cores


def _vmem_estimate(tm, th, c_in, c_out, x_bytes, w_bytes, out_bytes):
    """Rough VMEM working set for one grid step (double-buffered pipeline blocks)."""
    dbl = 2
    return (dbl * tm * c_in * x_bytes            # x token tile
            + dbl * c_in * th * w_bytes          # W1 column block
            + dbl * th * w_bytes                 # b1 block
            + dbl * th * c_out * w_bytes         # W2 row block
            + dbl * c_out * w_bytes              # b2
            + dbl * tm * c_out * out_bytes       # output tile
            + tm * c_out * 4                     # f32 accumulator scratch
            + 2 * tm * th * 4)                   # f32 fc1/GELU intermediates


def _select_tiles(m, c_in, hidden, c_out, x_bytes, w_bytes, out_bytes,
                  vmem_cap, two_cores, tm_req, th_req):
    budget = int(vmem_cap * 0.70)

    def est(tm, th):
        return _vmem_estimate(tm, th, c_in, c_out, x_bytes, w_bytes, out_bytes)

    # --- hidden (reduction) tile -------------------------------------------------
    if th_req is not None:
        th_eff = int(th_req)
    elif est(256, hidden) <= budget:
        # Whole W1/W2 fit: keep the weights VMEM-resident (constant block index);
        # they are DMA'd once total instead of once per token tile.
        th_eff = hidden
    else:
        th_eff = 512
        while th_eff > _LANE and est(128, th_eff) > budget:
            th_eff //= 2
    th_eff = min(th_eff, _round_up(hidden, _LANE))
    hidden_pad = hidden if th_eff == hidden else _round_up(hidden, th_eff)

    # --- token (parallel) tile ---------------------------------------------------
    if tm_req is not None:
        tm_eff = int(tm_req)
    else:
        tm_eff = None
        for cand in (1024, 768, 512, 384, 256, 128, 64, 32, 16, 8):
            if est(cand, th_eff) <= budget:
                tm_eff = cand
                break
        if tm_eff is None:
            tm_eff = _SUBLANE
    tm_eff = min(tm_eff, _round_up(m, _SUBLANE))
    # v7x has 2 TensorCores: give the "parallel" axis >= 2 tiles so both are busy.
    if two_cores and m > 2 * _SUBLANE and _round_up(m, tm_eff) // tm_eff < 2:
        tm_eff = _round_up((m + 1) // 2, _SUBLANE)
    m_pad = _round_up(m, tm_eff)

    vmem_limit = max(est(tm_eff, th_eff) + (16 << 20), 32 << 20)
    vmem_limit = min(vmem_limit, vmem_cap)
    return tm_eff, th_eff, m_pad, hidden_pad, int(vmem_limit)


def _mlp_kernel(x_ref, w1_ref, b1_ref, w2_ref, b2_ref, o_ref, acc_ref, *,
                approximate_gelu):
    h_idx = pl.program_id(1)

    # fc1 partial: (TM, C_in) @ (C_in, TH) on the MXU in native dtype, f32 accumulate.
    h = jnp.dot(x_ref[...], w1_ref[...], preferred_element_type=jnp.float32)
    h = h + b1_ref[...].astype(jnp.float32)  # (1, TH) broadcast over rows

    if approximate_gelu:
        # tanh approximation: transcendental runs on the EUP slot (cheaper when VALU-bound).
        g = 0.5 * h * (1.0 + jnp.tanh(jnp.float32(0.7978845608028654)
                                      * (h + jnp.float32(0.044715) * h * h * h)))
    else:
        # Exact GELU (torch.nn.GELU default): 0.5*x*(1+erf(x/sqrt(2))), in f32.
        g = 0.5 * h * (1.0 + lax.erf(h * jnp.float32(0.7071067811865476)))

    # dropout(p=0.0) is identity -> no-op.
    # TODO(synk): stochastic dropout (p>0, training) not implemented; module default is p=0.

    # fc2 partial: (TM, TH) @ (TH, C_out); accumulate over hidden tiles.
    partial = jnp.dot(g.astype(w2_ref.dtype), w2_ref[...],
                      preferred_element_type=jnp.float32)

    @pl.when(h_idx == 0)
    def _first():
        # Direct store on the first hidden tile: avoids a zero-init write + read.
        acc_ref[...] = partial

    @pl.when(h_idx > 0)
    def _accumulate():
        acc_ref[...] += partial

    @pl.when(h_idx == pl.num_programs(1) - 1)
    def _finalize():
        o_ref[...] = (acc_ref[...] + b2_ref[...].astype(jnp.float32)).astype(o_ref.dtype)


def mlp_pallas(x, w1, b1, w2, b2, *, tm=None, th=None, approximate_gelu=False):
    """Fused MLP: GELU(x @ W1 + b1) @ W2 + b2.

    x: (..., C_in); w1: (C_in, H); b1: (H,); w2: (H, C_out); b2: (C_out,)
    (weights transposed w.r.t. PyTorch nn.Linear). tm/th override the auto tile
    selection. Note: for best MXU utilisation on v6e/v7x, C_in/C_out should be
    multiples of 128 (ideally 256); smaller dims still run (block == full array)
    but underfill the systolic array.
    """
    orig_shape = x.shape
    c_in = orig_shape[-1]
    hidden = w1.shape[1]
    c_out = w2.shape[1]
    m = 1
    for d in orig_shape[:-1]:
        m *= d

    vmem_cap, two_cores = _tpu_vmem_and_cores()
    x_bytes = jnp.dtype(x.dtype).itemsize
    w_bytes = jnp.dtype(w1.dtype).itemsize
    tm_eff, th_eff, m_pad, hidden_pad, vmem_limit = _select_tiles(
        m, c_in, hidden, c_out, x_bytes, w_bytes, x_bytes,
        vmem_cap, two_cores, tm, th)

    x2d = x.reshape(m, c_in)
    if m_pad != m:
        x2d = jnp.pad(x2d, ((0, m_pad - m), (0, 0)))

    # Zero-pad the hidden dim so th_eff always divides it. Numerically exact:
    # padded units see h = 0 -> GELU(0) = 0 -> contribute nothing through zero W2 rows.
    if hidden_pad != hidden:
        hp = hidden_pad - hidden
        w1 = jnp.pad(w1, ((0, 0), (0, hp)))
        b1 = jnp.pad(b1, ((0, hp),))
        w2 = jnp.pad(w2, ((0, hp), (0, 0)))

    b1_2d = b1.reshape(1, hidden_pad)
    b2_2d = b2.reshape(1, c_out)

    n_tok = m_pad // tm_eff
    n_h = hidden_pad // th_eff
    grid = (n_tok, n_h)

    # Weights are re-read once per token tile only when H is tiled; with n_h == 1
    # they stay VMEM-resident (constant block index) and are read once total.
    weight_reads = n_tok if n_h > 1 else 1
    w_total_bytes = (w1.size * w1.dtype.itemsize + b1.size * b1.dtype.itemsize
                     + w2.size * w2.dtype.itemsize + b2.size * b2.dtype.itemsize)
    cost = pl.CostEstimate(
        flops=2 * m_pad * c_in * hidden_pad + 2 * m_pad * hidden_pad * c_out,
        transcendentals=m_pad * hidden_pad,
        bytes_accessed=(m_pad * c_in * x_bytes
                        + weight_reads * w_total_bytes
                        + m_pad * c_out * x_bytes),
    )

    kernel = functools.partial(_mlp_kernel, approximate_gelu=approximate_gelu)

    out2d = pl.pallas_call(
        kernel,
        out_shape=jax.ShapeDtypeStruct((m_pad, c_out), x.dtype),
        grid_spec=pltpu.PrefetchScalarGridSpec(
            num_scalar_prefetch=0,
            grid=grid,
            in_specs=[
                pl.BlockSpec((tm_eff, c_in), lambda i, h: (i, 0)),    # x token tile
                pl.BlockSpec((c_in, th_eff), lambda i, h: (0, h)),    # W1 column block
                pl.BlockSpec((1, th_eff), lambda i, h: (0, h)),       # b1 block
                pl.BlockSpec((th_eff, c_out), lambda i, h: (h, 0)),   # W2 row block
                pl.BlockSpec((1, c_out), lambda i, h: (0, 0)),        # b2 (resident)
            ],
            out_specs=pl.BlockSpec((tm_eff, c_out), lambda i, h: (i, 0)),
            scratch_shapes=[pltpu.VMEM((tm_eff, c_out), jnp.float32)],
        ),
        compiler_params=pltpu.CompilerParams(
            dimension_semantics=("parallel", "arbitrary"),
            vmem_limit_bytes=vmem_limit,
        ),
        cost_estimate=cost,
    )(x2d, w1, b1_2d, w2, b2_2d)

    if m_pad != m:
        out2d = out2d[:m]
    return out2d.reshape(*orig_shape[:-1], c_out)


def mlp_reference(x, w1, b1, w2, b2):
    h = jnp.matmul(x, w1) + b1
    h = 0.5 * h * (1.0 + lax.erf(h * jnp.float32(0.7071067811865476)))
    return jnp.matmul(h, w2) + b2


def _make_params(key, c_in, hidden, c_out, dtype=jnp.float32):
    k_w1, k_b1, k_w2, k_b2 = jax.random.split(key, 4)
    bound1 = 1.0 / (c_in ** 0.5)
    w1 = jax.random.uniform(k_w1, (c_in, hidden), minval=-bound1, maxval=bound1, dtype=dtype)
    b1 = jax.random.uniform(k_b1, (hidden,), minval=-bound1, maxval=bound1, dtype=dtype)
    bound2 = 1.0 / (hidden ** 0.5)
    w2 = jax.random.uniform(k_w2, (hidden, c_out), minval=-bound2, maxval=bound2, dtype=dtype)
    b2 = jax.random.uniform(k_b2, (c_out,), minval=-bound2, maxval=bound2, dtype=dtype)
    return w1, b1, w2, b2


if __name__ == "__main__":
    key = jax.random.PRNGKey(0)
    k_small, k_big, k_pad = jax.random.split(key, 3)

    # --- Small config matching the module defaults (single grid step per axis). ---
    B, N = 2, 8
    in_features, hidden_features, out_features = 4, 32, 4
    kx, kp = jax.random.split(k_small, 2)
    x = jax.random.normal(kx, (B, N, in_features), dtype=jnp.float32)
    w1, b1, w2, b2 = _make_params(kp, in_features, hidden_features, out_features)

    out = jax.block_until_ready(mlp_pallas(x, w1, b1, w2, b2))
    ref = mlp_reference(x, w1, b1, w2, b2)
    assert out.shape == (B, N, out_features)
    assert jnp.allclose(out, ref, atol=1e-5, rtol=1e-5), "small-config mismatch vs reference"

    # --- Moderate config: auto tile selection (weights typically VMEM-resident). ---
    B2, N2 = 2, 320                      # M = 640
    c_in2, h2, c_out2 = 128, 1024, 128
    kx2, kp2 = jax.random.split(k_big, 2)
    x2 = jax.random.normal(kx2, (B2, N2, c_in2), dtype=jnp.float32)
    w1b, b1b, w2b, b2b = _make_params(kp2, c_in2, h2, c_out2)

    out2 = jax.block_until_ready(mlp_pallas(x2, w1b, b1b, w2b, b2b))
    ref2 = mlp_reference(x2, w1b, b1b, w2b, b2b)
    assert out2.shape == (B2, N2, c_out2)
    assert float(jnp.max(jnp.abs(out2 - ref2))) < 5e-2, "auto-tile config mismatch vs reference"

    # --- Forced-tiling config: non-divisible H (1000 -> padded to 1024, n_h = 2),
    #     token tiling + M padding (TM = 256 -> M 640 padded to 768). ---
    h3 = 1000
    kx3, kp3 = jax.random.split(k_pad, 2)
    x3 = jax.random.normal(kx3, (B2, N2, c_in2), dtype=jnp.float32)
    w1c, b1c, w2c, b2c = _make_params(kp3, c_in2, h3, c_out2)

    out3 = jax.block_until_ready(mlp_pallas(x3, w1c, b1c, w2c, b2c, tm=256, th=512))
    ref3 = mlp_reference(x3, w1c, b1c, w2c, b2c)
    assert out3.shape == (B2, N2, c_out2)
    assert float(jnp.max(jnp.abs(out3 - ref3))) < 5e-2, "tiled/padded config mismatch vs reference"

    print("KERNEL_OK")
</pallas_src>

<mosaic_0001>
module attributes {stable_mosaic.version = 11 : i64} {
  func.func @_mlp_kernel(%arg0: i32, %arg1: i32, %arg2: memref<16x4xf32, #tpu.memory_space<vmem>>, %arg3: memref<4x32xf32, #tpu.memory_space<vmem>>, %arg4: memref<1x32xf32, #tpu.memory_space<vmem>>, %arg5: memref<32x4xf32, #tpu.memory_space<vmem>>, %arg6: memref<1x4xf32, #tpu.memory_space<vmem>>, %arg7: memref<16x4xf32, #tpu.memory_space<vmem>>, %arg8: memref<16x4xf32, #tpu.memory_space<vmem>>) attributes {dimension_semantics = [#tpu.dimension_semantics<parallel>, #tpu.dimension_semantics<arbitrary>], iteration_bounds = array<i64: 1, 1>, scalar_prefetch = 0 : i64, scratch_operands = 1 : i64, tpu.core_type = #tpu.core_type<tc>, window_params = [{transform_indices = @transform_0, window_bounds = array<i64: 16, 4>}, {transform_indices = @transform_1, window_bounds = array<i64: 4, 32>}, {transform_indices = @transform_2, window_bounds = array<i64: 1, 32>}, {transform_indices = @transform_3, window_bounds = array<i64: 32, 4>}, {pipeline_mode = #tpu.pipeline_mode<synchronous>, transform_indices = @transform_4, window_bounds = array<i64: 1, 4>}, {transform_indices = @transform_5, window_bounds = array<i64: 16, 4>}]} {
    %c0 = arith.constant 0 : index
    %c0_0 = arith.constant 0 : index
    %0 = vector.load %arg2[%c0, %c0_0] : memref<16x4xf32, #tpu.memory_space<vmem>>, vector<16x4xf32>
    %c0_1 = arith.constant 0 : index
    %c0_2 = arith.constant 0 : index
    %1 = vector.load %arg3[%c0_1, %c0_2] : memref<4x32xf32, #tpu.memory_space<vmem>>, vector<4x32xf32>
    %cst = arith.constant dense<0.000000e+00> : vector<16x32xf32>
    %2 = tpu.matmul %0, %1, %cst {dimension_numbers = #tpu.dot_dimension_numbers<[1], [0], [0], [1], [0, 0, 1, 1], [], []>} : vector<16x4xf32>, vector<4x32xf32>, vector<16x32xf32> -> vector<16x32xf32>
    %c0_3 = arith.constant 0 : index
    %c0_4 = arith.constant 0 : index
    %3 = vector.load %arg4[%c0_3, %c0_4] : memref<1x32xf32, #tpu.memory_space<vmem>>, vector<1x32xf32>
    %4 = vector.broadcast %3 : vector<1x32xf32> to vector<16x32xf32>
    %5 = arith.addf %2, %4 : vector<16x32xf32>
    %cst_5 = arith.constant 5.000000e-01 : f32
    %6 = vector.broadcast %cst_5 : f32 to vector<16x32xf32>
    %7 = arith.mulf %6, %5 : vector<16x32xf32>
    %cst_6 = arith.constant 0.707106769 : f32
    %8 = vector.broadcast %cst_6 : f32 to vector<16x32xf32>
    %9 = arith.mulf %5, %8 : vector<16x32xf32>
    %10 = math.erf %9 : vector<16x32xf32>
    %cst_7 = arith.constant 1.000000e+00 : f32
    %11 = vector.broadcast %cst_7 : f32 to vector<16x32xf32>
    %12 = arith.addf %11, %10 : vector<16x32xf32>
    %13 = arith.mulf %7, %12 : vector<16x32xf32>
    %c0_8 = arith.constant 0 : index
    %c0_9 = arith.constant 0 : index
    %14 = vector.load %arg5[%c0_8, %c0_9] : memref<32x4xf32, #tpu.memory_space<vmem>>, vector<32x4xf32>
    %cst_10 = arith.constant dense<0.000000e+00> : vector<16x4xf32>
    %15 = tpu.matmul %13, %14, %cst_10 {dimension_numbers = #tpu.dot_dimension_numbers<[1], [0], [0], [1], [0, 0, 1, 1], [], []>} : vector<16x32xf32>, vector<32x4xf32>, vector<16x4xf32> -> vector<16x4xf32>
    %c0_i32 = arith.constant 0 : i32
    %16 = arith.cmpi eq, %arg1, %c0_i32 : i32
    %17 = arith.extui %16 : i1 to i32
    %c0_i32_11 = arith.constant 0 : i32
    %18 = arith.cmpi ne, %17, %c0_i32_11 : i32
    scf.if %18 {
      %c0_16 = arith.constant 0 : index
      %c0_17 = arith.constant 0 : index
      %25 = vector.load %arg8[%c0_16, %c0_17] : memref<16x4xf32, #tpu.memory_space<vmem>>, vector<16x4xf32>
      tpu.vector_store %arg8[%c0_16, %c0_17], %15 {strides = array<i32>} : memref<16x4xf32, #tpu.memory_space<vmem>>, vector<16x4xf32>,
    } else {
    }
    %c0_i32_12 = arith.constant 0 : i32
    %19 = arith.cmpi sgt, %arg1, %c0_i32_12 : i32
    %20 = arith.extui %19 : i1 to i32
    %c0_i32_13 = arith.constant 0 : i32
    %21 = arith.cmpi ne, %20, %c0_i32_13 : i32
    scf.if %21 {
      %c0_16 = arith.constant 0 : index
      %c0_17 = arith.constant 0 : index
      %25 = vector.load %arg8[%c0_16, %c0_17] : memref<16x4xf32, #tpu.memory_space<vmem>>, vector<16x4xf32>
      %26 = arith.addf %25, %15 : vector<16x4xf32>
      %c0_18 = arith.constant 0 : index
      %c0_19 = arith.constant 0 : index
      %27 = vector.load %arg8[%c0_18, %c0_19] : memref<16x4xf32, #tpu.memory_space<vmem>>, vector<16x4xf32>
      tpu.vector_store %arg8[%c0_18, %c0_19], %26 {strides = array<i32>} : memref<16x4xf32, #tpu.memory_space<vmem>>, vector<16x4xf32>,
    } else {
    }
    %c0_i32_14 = arith.constant 0 : i32
    %22 = arith.cmpi eq, %arg1, %c0_i32_14 : i32
    %23 = arith.extui %22 : i1 to i32
    %c0_i32_15 = arith.constant 0 : i32
    %24 = arith.cmpi ne, %23, %c0_i32_15 : i32
    scf.if %24 {
      %c0_16 = arith.constant 0 : index
      %c0_17 = arith.constant 0 : index
      %25 = vector.load %arg8[%c0_16, %c0_17] : memref<16x4xf32, #tpu.memory_space<vmem>>, vector<16x4xf32>
      %c0_18 = arith.constant 0 : index
      %c0_19 = arith.constant 0 : index
      %26 = vector.load %arg6[%c0_18, %c0_19] : memref<1x4xf32, #tpu.memory_space<vmem>>, vector<1x4xf32>
      %27 = vector.broadcast %26 : vector<1x4xf32> to vector<16x4xf32>
      %28 = arith.addf %25, %27 : vector<16x4xf32>
      %c0_20 = arith.constant 0 : index
      %c0_21 = arith.constant 0 : index
      %29 = vector.load %arg7[%c0_20, %c0_21] : memref<16x4xf32, #tpu.memory_space<vmem>>, vector<16x4xf32>
      tpu.vector_store %arg7[%c0_20, %c0_21], %28 {strides = array<i32>} : memref<16x4xf32, #tpu.memory_space<vmem>>, vector<16x4xf32>,
    } else {
    }
    return
  }
  func.func @transform_0(%arg0: i32, %arg1: i32) -> (i32, i32) {
    %c0_i32 = arith.constant 0 : i32
    %c0_i32_0 = arith.constant 0 : i32
    return %arg0, %c0_i32 : i32, i32
  }
  func.func @transform_1(%arg0: i32, %arg1: i32) -> (i32, i32) {
    %c0_i32 = arith.constant 0 : i32
    %c0_i32_0 = arith.constant 0 : i32
    return %c0_i32, %arg1 : i32, i32
  }
  func.func @transform_2(%arg0: i32, %arg1: i32) -> (i32, i32) {
    %c0_i32 = arith.constant 0 : i32
    %c0_i32_0 = arith.constant 0 : i32
    return %c0_i32, %arg1 : i32, i32
  }
  func.func @transform_3(%arg0: i32, %arg1: i32) -> (i32, i32) {
    %c0_i32 = arith.constant 0 : i32
    %c0_i32_0 = arith.constant 0 : i32
    return %arg1, %c0_i32 : i32, i32
  }
  func.func @transform_4(%arg0: i32, %arg1: i32) -> (i32, i32) {
    %c0_i32 = arith.constant 0 : i32
    %c0_i32_0 = arith.constant 0 : i32
    %c0_i32_1 = arith.constant 0 : i32
    return %c0_i32, %c0_i32_0 : i32, i32
  }
  func.func @transform_5(%arg0: i32, %arg1: i32) -> (i32, i32) {
    %c0_i32 = arith.constant 0 : i32
    %c0_i32_0 = arith.constant 0 : i32
    return %arg0, %c0_i32 : i32, i32
  }
}

</mosaic_0001>

<bundles_post_ra>
// kernel: tpu_custom_call.1
= control target key start
LH: loop header
LB: loop body
LE: loop exit
PB: predicated region body
PF: predicated region fallthrough
CT: control target
= control target key end

     0   :  { %vm34_vm0 = vcmask 1043456   ;;  %vm27_vm1 = vcmask 31744   ;;  %vm153_vm10 = vcmask 261120   ;;  %s321_s1 = inlined_call_operand.vmem [shape: f32[4,32], index: 1, kind: input, shape index: {}]   ;;  %s322_s0 = inlined_call_operand.vmem [shape: f32[16,4], index: 0, kind: input, shape index: {}]   ;;  %s323_s2 = inlined_call_operand.vmem [shape: f32[1,32], index: 2, kind: input, shape index: {}]   ;;  %s324_s4 = inlined_call_operand.vmem [shape: f32[1,4], index: 4, kind: input, shape index: {}]   ;;  %s325_s3 = inlined_call_operand.vmem [shape: f32[32,4], index: 3, kind: input, shape index: {}]   ;;  %s326_s5 = inlined_call_operand.vmem [shape: f32[16,4], index: 5, kind: output, shape index: {}]  }
   0x1   :  { %v22_v0 = vld [vmem:[%s321_s1] sm:$0xf]  ;;  %v21_v2 = vld [vmem:[%s322_s0 + $0x8] sm:$0xff]  ;;  %v152_v24 = vld [vmem:[%s325_s3 + $0x18] sm:$0xff] }
   0x2   :  { %v20_v1 = vld [vmem:[%s322_s0] sm:$0xff]  ;;  %216 = vmatpush.msk.msra.mxu0 %vm34_vm0, %v22_v0  ;;  %223 = vmatpush.msk.msra.mxu3 %vm34_vm0, %v22_v0  ;;  %v151_v28 = vld [vmem:[%s325_s3 + $0x10] sm:$0xff]  ;;  %v150_v33 = vld [vmem:[%s325_s3 + $0x8] sm:$0xff] }
   0x3   :  { %217 = vmatmul.msk.f32.vlgmr.msra.gmra.mxu0 %vm27_vm1, %v20_v1  ;;  %218 = vmatmul.msk.f32.vlgmr.msra.gmra.mxu3 %vm27_vm1, %v21_v2  ;;  %v228_v3 = vld [vmem:[%s323_s2] ss:$0 sm:$0xff] }
   0x4   :  { %172 = vmatpush.msra.mxu1 %v152_v24  ;;  %224 = vmatpush.msra.mxu2 %v152_v24  ;;  %v149_v35 = vld [vmem:[%s325_s3] sm:$0xff] }
   0x6   :  { %173 = vmatpush.msra.mxu1 %v151_v28  ;;  %225 = vmatpush.msra.mxu2 %v151_v28 }
   0x8   :  { %174 = vmatpush.msra.mxu1 %v150_v33  ;;  %226 = vmatpush.msra.mxu2 %v150_v33 }
   0xa   :  { %175 = vmatpush.msra.mxu1 %v149_v35  ;;  %227 = vmatpush.msra.mxu2 %v149_v35 }
  0x80   :  { %v55_v4 = vpop.f32.mrf.mxu0 }
  0x81   :  { %v278_v5 = vadd.f32 %v228_v3, %v55_v4 }
  0x83   :  { %v281_v6 = vmul.f32 0.70710677, %v278_v5 }
  0x85   :  { %v65_v7 = vmul.f32 %v281_v6, %v281_v6 }
  0x86   :  { %v58_v8 = vpop.f32.mrf.mxu3 }
  0x87   :  { %v66_v9 = vmin.f32 %v65_v7, 16.0  ;;  %v285_v10 = vadd.f32 %v228_v3, %v58_v8 }
  0x89   :  { %v67_v11 = vmul.f32 2.1237322e-06, %v66_v9  ;;  %v78_v12 = vmul.f32 3.8918573e-05, %v66_v9  ;;  %v288_v13 = vmul.f32 0.70710677, %v285_v10 }
  0x8b   :  { %v68_v14 = vadd.f32 0.00028619796, %v67_v11  ;;  %v79_v15 = vadd.f32 0.001143296, %v78_v12  ;;  %v105_v16 = vmul.f32 %v288_v13, %v288_v13 }
  0x8d   :  { %v69_v17 = vmul.f32 %v68_v14, %v66_v9  ;;  %v80_v18 = vmul.f32 %v79_v15, %v66_v9  ;;  %v106_v19 = vmin.f32 %v105_v16, 16.0 }
  0x8f   :  { %v70_v20 = vadd.f32 0.0036580483, %v69_v17  ;;  %v81_v21 = vadd.f32 0.014752088, %v80_v18  ;;  %v107_v22 = vmul.f32 2.1237322e-06, %v106_v19 }
  0x90   :  { %v118_v23 = vmul.f32 3.8918573e-05, %v106_v19  ;;  %v61_v18 = vmul.f32 0.5, %v278_v5  ;;  %v229_v5 = vld [vmem:[%s324_s4] ss:$0 sm:$0xff] }
  0x91   :  { %v82_v25 = vmul.f32 %v81_v21, %v66_v9  ;;  %v108_v26 = vadd.f32 0.00028619796, %v107_v22  ;;  %v71_v30 = vmul.f32 %v70_v20, %v66_v9 }
  0x92   :  { %v119_v27 = vadd.f32 0.001143296, %v118_v23 }
  0x93   :  { %v83_v29 = vadd.f32 0.112945676, %v82_v25  ;;  %v109_v31 = vmul.f32 %v108_v26, %v106_v19  ;;  %v72_v39 = vadd.f32 0.05243302, %v71_v30  ;;  %v62_v26 = vmul.f32 0.5, %v285_v10 }
  0x94   :  { %v120_v32 = vmul.f32 %v119_v27, %v106_v19 }
  0x95   :  { %v84_v34 = vmul.f32 %v83_v29, %v66_v9  ;;  %v110_v38 = vadd.f32 0.0036580483, %v109_v31  ;;  %v73_v45 = vmul.f32 %v72_v39, %v66_v9 }
  0x96   :  { %v121_v36 = vadd.f32 0.014752088, %v120_v32 }
  0x97   :  { %v85_v37 = vadd.f32 0.4994258, %v84_v34  ;;  %v111_v44 = vmul.f32 %v110_v38, %v106_v19  ;;  %v74_v49 = vadd.f32 0.18741608, %v73_v45 }
  0x98   :  { %v122_v40 = vmul.f32 %v121_v36, %v106_v19 }
  0x99   :  { %v86_v41 = vmul.f32 %v85_v37, %v66_v9  ;;  %v112_v48 = vadd.f32 0.05243302, %v111_v44  ;;  %v75_v54 = vmul.f32 %v74_v49, %v66_v9 }
  0x9a   :  { %v123_v42 = vadd.f32 0.112945676, %v122_v40 }
  0x9b   :  { %v87_v43 = vadd.f32 1.0, %v86_v41  ;;  %v113_v53 = vmul.f32 %v112_v48, %v106_v19  ;;  %v76_v59 = vadd.f32 1.1283791, %v75_v54 }
  0x9c   :  { %v124_v46 = vmul.f32 %v123_v42, %v106_v19 }
  0x9d   :  { %230 = vrcp.f32 %v87_v43  ;;  %v99_v57 = vand.u32 2147483648, %v87_v43  ;;  %v114_v58 = vadd.f32 0.18741608, %v113_v53  ;;  %v97_v61 = vand.u32 2147483647, %v87_v43 }
  0x9e   :  { %v125_v47 = vadd.f32 0.4994258, %v124_v46  ;;  %vm93_vm3 = vweird.f32 %v87_v43  ;;  %v77_v3 = vmul.f32 %v76_v59, %v281_v6 }
  0x9f   :  { %v100_v0 = vor.u32 1.1754944e-38, %v99_v57  ;;  %v115_v1 = vmul.f32 %v114_v58, %v106_v19  ;;  %vm98_vm5 = vcmp.eq.f32.partialorder %v97_v61, 8.507059e+37 }
  0xa0   :  { %v126_v50 = vmul.f32 %v125_v47, %v106_v19 }
  0xa1   :  { %v116_v12 = vadd.f32 1.1283791, %v115_v1 }
  0xa2   :  { %v127_v51 = vadd.f32 1.0, %v126_v50 }
  0xa3   :  { %v231_v52 = vpop.eup %230  ;;  %v117_v6 = vmul.f32 %v116_v12, %v288_v13 }
  0xa4   :  { %v89_v55 = vmul.f32 %v231_v52, %v87_v43  ;;  %232 = vrcp.f32 %v127_v51  ;;  %vm94_vm2 = vweird.f32 %v231_v52  ;;  %v139_v11 = vand.u32 2147483648, %v127_v51 }
  0xa5   :  { %vm95_vm4 = vmor %vm93_vm3, %vm94_vm2  ;;  %v137_v15 = vand.u32 2147483647, %v127_v51  ;;  %vm133_vm7 = vweird.f32 %v127_v51 }
  0xa6   :  { %v90_v56 = vsub.f32 1.0, %v89_v55  ;;  %v140_v19 = vor.u32 1.1754944e-38, %v139_v11 }
  0xa7   :  { %vm138_vm9 = vcmp.eq.f32.partialorder %v137_v15, 8.507059e+37 }
  0xa8   :  { %v91_v60 = vmul.f32 %v231_v52, %v90_v56 }
  0xaa   :  { %v233_v62 = vpop.eup %232  ;;  %v92_v63 = vadd.f32 %v231_v52, %v91_v60 }
  0xab   :  { %v129_v2 = vmul.f32 %v233_v62, %v127_v51  ;;  %vm134_vm6 = vweird.f32 %v233_v62 }
  0xac   :  { %v96_v4 = vsel %vm95_vm4, %v231_v52, %v92_v63  ;;  %vm135_vm8 = vmor %vm133_vm7, %vm134_vm6 }
  0xad   :  { %v101_v7 = vsel %vm98_vm5, %v100_v0, %v96_v4  ;;  %v130_v8 = vsub.f32 1.0, %v129_v2 }
  0xae   :  { %v102_v9 = vmul.f32 %v101_v7, %v77_v3 }
  0xaf   :  { %v131_v14 = vmul.f32 %v233_v62, %v130_v8 }
  0xb0   :  { %v219_v16 = vclamps-f32 %v102_v9, 1.0 }
  0xb1   :  { %v132_v17 = vadd.f32 %v233_v62, %v131_v14 }
  0xb2   :  { %v145_v20 = vadd.f32 1.0, %v219_v16 }
  0xb3   :  { %v136_v21 = vsel %vm135_vm8, %v233_v62, %v132_v17 }
  0xb4   :  { %v141_v22 = vsel %vm138_vm9, %v140_v19, %v136_v21  ;;  %v147_v23 = vmul.f32 %v145_v20, %v61_v18 }
  0xb5   :  { %v142_v24 = vmul.f32 %v141_v22, %v117_v6 }
  0xb6   :  { %221 = vmatmul.msk.f32.vlgmr.msra.gmra.mxu1 %vm153_vm10, %v147_v23 }
  0xb7   :  { %v220_v25 = vclamps-f32 %v142_v24, 1.0 }
  0xb9   :  { %v146_v27 = vadd.f32 1.0, %v220_v25 }
  0xbb   :  { %v148_v28 = vmul.f32 %v146_v27, %v62_v26 }
  0xbd   :  { %222 = vmatmul.msk.f32.vlgmr.msra.gmra.mxu2 %vm153_vm10, %v148_v28 }
 0x133   :  { %v177_v29 = vpop.f32.mrf.mxu1 }
 0x134   :  { %187 = vst.msk [vmem:[#allocation2] sm:$0xff] %vm27_vm1, %v177_v29 }
 0x13b   :  { %v202_v13 = vld [vmem:[#allocation2] sm:$0xff] }
 0x13c   :  { %v208_v30 = vadd.f32 %v229_v5, %v202_v13 }
 0x13e   :  { %210 = vst.msk [vmem:[%s326_s5] sm:$0xff] %vm27_vm1, %v208_v30 }
 0x140   :  { %v180_v31 = vpop.f32.mrf.mxu2 }
 0x141   :  { %188 = vst.msk [vmem:[#allocation2 + $0x8] sm:$0xff] %vm27_vm1, %v180_v31 }
 0x148   :  { %v203_v10 = vld [vmem:[#allocation2 + $0x8] sm:$0xff] }
 0x149   :  { %v209_v32 = vadd.f32 %v229_v5, %v203_v10 }
 0x14b   :  { %211 = vst.msk [vmem:[%s326_s5 + $0x8] sm:$0xff] %vm27_vm1, %v209_v32 }

</bundles_post_ra>
